<compile_context>
chip_gen: v5e
topology: v5e:2x2
jax: 0.10.0
libtpu: 0.0.40
codegen_flags: <defaults>
</compile_context>

<pallas_src>
import jax
import jax.numpy as jnp
from jax.experimental import pallas as pl
from jax.experimental.pallas import tpu as pltpu


_TARGET_BLOCK_BYTES = 4 * 1024 * 1024   # ~4 MiB blocks (>=95% of streaming roofline on v7x)
_MIN_BLOCK_BYTES = 1 * 1024 * 1024      # don't shrink below ~1 MiB while chasing grid steps
_VMEM_LIMIT_BYTES = 32 * 1024 * 1024    # 4-buffer working set (~16 MiB) + headroom; legal
                                        # on v5e/v6e (128 MiB phys) and v7x (64 MiB phys)


def _drop_path_kernel(scale_ref, x_ref, o_ref):
    # scale_ref: (block_b, 1, 1) float32   value = mask[b] / keep_prob
    # x_ref / o_ref: (block_b, tile_r, lane)
    # Single broadcast multiply in f32 (casts are free; kernel is HBM-bound).
    o_ref[...] = (x_ref[...].astype(jnp.float32) * scale_ref[...]).astype(o_ref.dtype)


def _sublane_pack(dtype):
    """Rows-per-sublane packing factor for the dtype (8 f32, 16 bf16, 32 int8)."""
    return {4: 8, 2: 16, 1: 32}.get(jnp.dtype(dtype).itemsize, 8)


def _choose_lane(padded, pack, max_lane=4096):
    """Largest lane (multiple of 128) dividing `padded`, preferring rows % pack == 0."""
    cap = min(max_lane, padded)
    cap -= cap % 128
    fallback = None
    for cand in range(cap, 127, -128):
        if padded % cand == 0:
            if (padded // cand) % pack == 0:
                return cand
            if fallback is None:
                fallback = cand
    return fallback if fallback is not None else 128


def _plan_blocks(batch, rows, lane, itemsize, pack):
    """Pick (block_b, tile_r) targeting ~4 MiB blocks and >=2 grid steps."""
    row_bytes = lane * itemsize
    sample_bytes = rows * row_bytes

    if sample_bytes >= _TARGET_BLOCK_BYTES:
        # Big per-sample payload: one sample per block, tile the rows.
        block_b = 1
        tile_r = (_TARGET_BLOCK_BYTES // row_bytes) // pack * pack
        tile_r = max(pack, min(tile_r, rows))
    else:
        # Small per-sample payload: pack several samples per block.
        tile_r = rows
        block_b = max(1, min(batch, _TARGET_BLOCK_BYTES // max(sample_bytes, 1)))
        # Megacore (v7x has 2 TCs): aim for >=8 batch steps while blocks stay >= ~1 MiB.
        min_block_b = max(1, _MIN_BLOCK_BYTES // max(sample_bytes, 1))
        while block_b > min_block_b and -(-batch // block_b) < 8:
            block_b = max(min_block_b, (block_b + 1) // 2)

    # Never let the grid collapse to a single step when the batch allows >=2.
    n_steps = -(-batch // block_b) * -(-rows // tile_r)
    if n_steps < 2 and batch >= 2:
        block_b = (batch + 1) // 2
    return block_b, tile_r


def drop_path(x, drop_prob=0.0, training=False, *, key=None, donate_x=False):
    """Stochastic depth per sample. x: (B, ...) array."""
    if drop_prob == 0.0 or not training:
        return x
    if key is None:
        raise ValueError("drop_path in training mode requires an explicit PRNG `key`")

    keep_prob = 1.0 - drop_prob
    batch = x.shape[0]
    per_sample = 1
    for d in x.shape[1:]:
        per_sample *= d
    if batch == 0 or per_sample == 0:
        return x

    # Per-sample scale = floor(keep_prob + U[0,1)) / keep_prob, in float32
    # (avoids bf16 rounding flipping the mask bit).
    u = jax.random.uniform(key, (batch,), dtype=jnp.float32)
    scale = jnp.floor(jnp.float32(keep_prob) + u) * jnp.float32(1.0 / keep_prob)
    scale3 = scale.reshape(batch, 1, 1)

    itemsize = jnp.dtype(x.dtype).itemsize
    pack = _sublane_pack(x.dtype)

    # Flatten each sample; pad ONLY if per_sample is not already a multiple of
    # 128 (padding + trailing slice each cost a full extra HBM pass).
    x2 = x.reshape(batch, per_sample)
    pad = (-per_sample) % 128
    if pad:
        x2 = jnp.pad(x2, ((0, 0), (0, pad)))
    padded = per_sample + pad

    lane = _choose_lane(padded, pack)
    rows = padded // lane
    x3 = x2.reshape(batch, rows, lane)

    block_b, tile_r = _plan_blocks(batch, rows, lane, itemsize, pack)
    grid = (pl.cdiv(batch, block_b), pl.cdiv(rows, tile_r))

    # Alias the (padded) input buffer to the output when it is a kernel-local
    # temp (pad > 0, never read again) or the caller donates x.
    aliases = {1: 0} if (pad or donate_x) else {}

    out = pl.pallas_call(
        _drop_path_kernel,
        out_shape=jax.ShapeDtypeStruct((batch, rows, lane), x.dtype),
        grid=grid,
        in_specs=[
            pl.BlockSpec((block_b, 1, 1), lambda i, j: (i, 0, 0)),
            pl.BlockSpec((block_b, tile_r, lane), lambda i, j: (i, j, 0)),
        ],
        out_specs=pl.BlockSpec((block_b, tile_r, lane), lambda i, j: (i, j, 0)),
        compiler_params=pltpu.CompilerParams(
            dimension_semantics=("parallel", "parallel"),
            vmem_limit_bytes=_VMEM_LIMIT_BYTES,
        ),
        input_output_aliases=aliases,
    )(scale3, x3)

    if pad:
        out = out.reshape(batch, padded)[:, :per_sample]
    return out.reshape(x.shape)


class DropPath:
    """Drop paths (stochastic depth) per sample."""

    def __init__(self, drop_prob=None):
        self.drop_prob = drop_prob if drop_prob is not None else 0.0
        self.training = True

    def __call__(self, x, key=None):
        return drop_path(x, self.drop_prob, self.training, key=key)


if __name__ == "__main__":
    key = jax.random.PRNGKey(0)
    kx, kmask, kx2, kmask2 = jax.random.split(key, 4)

    drop_prob = 0.3
    keep_prob = 1.0 - drop_prob

    # --- Test 1: f32, no-padding path (per_sample = 4*16*16 = 1024, mult of 128).
    B, C, H, W = 2, 4, 16, 16
    x = jax.random.normal(kx, (B, C, H, W), dtype=jnp.float32)

    module = DropPath(drop_prob)
    module.training = True
    out = jax.block_until_ready(module(x, key=kmask))

    u = jax.random.uniform(kmask, (B,), dtype=jnp.float32)
    mask = jnp.floor(jnp.float32(keep_prob) + u).reshape(B, 1, 1, 1)
    ref = (x / keep_prob) * mask
    assert out.shape == x.shape and out.dtype == x.dtype
    assert jnp.allclose(out, ref, atol=1e-6, rtol=1e-6)

    # --- Test 2: bf16, padded fallback path (per_sample = 5*7*9 = 315, not mult of 128).
    B2 = 3
    x2 = jax.random.normal(kx2, (B2, 5, 7, 9), dtype=jnp.bfloat16)
    out2 = jax.block_until_ready(drop_path(x2, drop_prob, True, key=kmask2))

    u2 = jax.random.uniform(kmask2, (B2,), dtype=jnp.float32)
    scale2 = (jnp.floor(jnp.float32(keep_prob) + u2) *
              jnp.float32(1.0 / keep_prob)).reshape(B2, 1, 1, 1)
    ref2 = (x2.astype(jnp.float32) * scale2).astype(jnp.bfloat16)
    assert out2.shape == x2.shape and out2.dtype == x2.dtype
    assert jnp.allclose(out2.astype(jnp.float32), ref2.astype(jnp.float32),
                        atol=1e-2, rtol=1e-2)

    # --- Eval / drop_prob=0 path returns x unchanged (no key required).
    module_eval = DropPath(drop_prob)
    module_eval.training = False
    out_eval = jax.block_until_ready(module_eval(x))
    assert jnp.array_equal(out_eval, x)

    print("KERNEL_OK")
</pallas_src>

<mosaic_0001>
module attributes {stable_mosaic.version = 11 : i64} {
  func.func @_drop_path_kernel(%arg0: i32, %arg1: i32, %arg2: memref<1x1x1xf32, #tpu.memory_space<vmem>>, %arg3: memref<1x8x128xf32, #tpu.memory_space<vmem>>, %arg4: memref<1x8x128xf32, #tpu.memory_space<vmem>>) attributes {dimension_semantics = [#tpu.dimension_semantics<parallel>, #tpu.dimension_semantics<parallel>], iteration_bounds = array<i64: 2, 1>, scalar_prefetch = 0 : i64, scratch_operands = 0 : i64, tpu.core_type = #tpu.core_type<tc>, window_params = [{transform_indices = @transform_0, window_bounds = array<i64: 1, 1, 1>}, {transform_indices = @transform_1, window_bounds = array<i64: 1, 8, 128>}, {transform_indices = @transform_2, window_bounds = array<i64: 1, 8, 128>}]} {
    %c0 = arith.constant 0 : index
    %c0_0 = arith.constant 0 : index
    %c0_1 = arith.constant 0 : index
    %0 = vector.load %arg3[%c0, %c0_0, %c0_1] : memref<1x8x128xf32, #tpu.memory_space<vmem>>, vector<1x8x128xf32>
    %c0_2 = arith.constant 0 : index
    %c0_3 = arith.constant 0 : index
    %c0_4 = arith.constant 0 : index
    %1 = vector.load %arg2[%c0_2, %c0_3, %c0_4] : memref<1x1x1xf32, #tpu.memory_space<vmem>>, vector<1x1x1xf32>
    %2 = vector.broadcast %1 : vector<1x1x1xf32> to vector<1x8x128xf32>
    %3 = arith.mulf %0, %2 : vector<1x8x128xf32>
    %c0_5 = arith.constant 0 : index
    %c0_6 = arith.constant 0 : index
    %c0_7 = arith.constant 0 : index
    %4 = vector.load %arg4[%c0_5, %c0_6, %c0_7] : memref<1x8x128xf32, #tpu.memory_space<vmem>>, vector<1x8x128xf32>
    tpu.vector_store %arg4[%c0_5, %c0_6, %c0_7], %3 {strides = array<i32>} : memref<1x8x128xf32, #tpu.memory_space<vmem>>, vector<1x8x128xf32>,
    return
  }
  func.func @transform_0(%arg0: i32, %arg1: i32) -> (i32, i32, i32) {
    %c0_i32 = arith.constant 0 : i32
    %c0_i32_0 = arith.constant 0 : i32
    %c0_i32_1 = arith.constant 0 : i32
    return %arg0, %c0_i32, %c0_i32_0 : i32, i32, i32
  }
  func.func @transform_1(%arg0: i32, %arg1: i32) -> (i32, i32, i32) {
    %c0_i32 = arith.constant 0 : i32
    %c0_i32_0 = arith.constant 0 : i32
    return %arg0, %arg1, %c0_i32 : i32, i32, i32
  }
  func.func @transform_2(%arg0: i32, %arg1: i32) -> (i32, i32, i32) {
    %c0_i32 = arith.constant 0 : i32
    %c0_i32_0 = arith.constant 0 : i32
    return %arg0, %arg1, %c0_i32 : i32, i32, i32
  }
}

</mosaic_0001>

<bundles_post_ra>
// kernel: tpu_custom_call.1
= control target key start
LH: loop header
LB: loop body
LE: loop exit
PB: predicated region body
PF: predicated region fallthrough
CT: control target
= control target key end

     0   :  { %7 = vsyncpa [#allocation3], 0  ;;  %s641_s0 = inlined_call_operand.vmem [shape: f32[2,1,1], index: 0, kind: input, shape index: {}]   ;;  %s642_s1 = inlined_call_operand.hbm [shape: f32[2,8,128], index: 1, kind: input, shape index: {}]   ;;  %s643_s2 = inlined_call_operand.hbm [shape: f32[2,8,128], index: 2, kind: output, shape index: {}]  }
   0x1   :  { %9 = vsyncpa [#allocation3 + $0x1], 0 }
   0x2   :  { %10 = vsyncpa [#allocation4], 0 }
   0x3   :  { %12 = vsyncpa [#allocation4 + $0x1], 0  ;;  %s516_s9 = smov 0   ;;  %s518_s10 = smov 0  }
   0x4   :  { %s520_s11 = smov 0   ;;  %s522_s12 = smov 0  }
   0x5   :  { %s524_s13 = smov 0   ;;  %s526_s14 = smov 0  }
   0x6 LB: > { %s308_s15 = sadd.s32 4294967295, %s498_s14   ;;  %s309_s16 = sadd.s32 4294967294, %s498_s14   ;;  %s498_s14 = sphi %s526_s14, %s18_s14   ;;  %s494_s13 = sphi %s524_s13, %s652_s13   ;;  %s490_s12 = sphi %s522_s12, %s651_s12   ;;  %s486_s11 = sphi %s520_s11, %s650_s11   ;;  %s482_s10 = sphi %s518_s10, %s649_s10   ;;  %s478_s9 = sphi %s516_s9, %s648_s9  }
   0x7   : > { %s30_s17 = sadd.s32 1, %s494_s13  ;;  %s65_s18 = sadd.s32 1, %s486_s11 }
   0x8   : > { %p32_p0 = scmp.ge.s32.totalorder %s30_s17, 2  ;;  %p72_p1 = scmp.ne.s32.totalorder %s486_s11, %s482_s10 }
   0x9   : > { %p73_p2 = scmp.eq.s32.totalorder %s498_s14, 0  ;;  %p78_p3 = scmp.ne.s32.totalorder %s482_s10, %s478_s9 }
   0xa   : > { %s654_s17 = smov (%p32_p0, %s30_s17), 0  ;;  %p79_p5 = scmp.eq.s32.totalorder %s308_s15, 0 }
   0xb   : > { %p557_p4 = por %p73_p2, %p72_p1  ;;  %s60_s20 = ssub.s32 %s494_s13, %s654_s17 }
   0xc   : > { %p104_p6 = scmp.eq.s32.totalorder %s308_s15, 1  ;;  %p63_p7 = scmp.eq.s32.totalorder %s60_s20, 0 }
   0xd   : > { %p563_p8 = por %p79_p5, %p78_p3  ;;  %p110_p10 = scmp.eq.s32.totalorder %s309_s16, 1 }
   0xe   : > { %p567_p9 = por %p104_p6, %p72_p1  ;;  %p311_p12 = scmp.ge.s32.totalorder %s498_s14, 2 }
   0xf   : > { %s572_s23 = scalar_select %p63_p7, %s486_s11, %s65_s18  }
  0x10   : > { %p574_p11 = por %p110_p10, %p78_p3  ;;  %p333_p13 = scmp.lt.s32.totalorder %s498_s14, 2 }
  0x11   : > { %s136_s25 = sand.u32 1, %s486_s11   ;;  %s313_s27 = sshll.u32 %s494_s13, 3 }
  0x12   : > { %s312_s26 = sshll.u32 %s136_s25, 3  ;;  %s145_s30 = scalar_lea.hbm %s642_s1, %s313_s27 }
  0x13   : > { %s140_s3 = scalar_lea.vmem [#allocation2], %s312_s26  ;;  %s147_s5 = sshll.u32 %s145_s30, 4  ;;  %s148_s5 = int_to_ptr.hbm [resolvable:$true] %s147_s5 }
  0x14   : > { %s149_s4 = sshll.u32 %s140_s3, 4  ;;  %p326_p0 = pnand %p333_p13, %p557_p4  ;;  %s150_s4 = int_to_ptr.vmem [resolvable:$true] %s149_s4 }
  0x15   : > { %p314_p1 = scmp.ge.s32.totalorder %s498_s14, 1  ;;  %p154_p2 = scmp.lt.s32.totalorder %s498_s14, 3 }
  0x16   : > { %s137_s6 = scalar_lea.sflag [#allocation3], %s136_s25 }
  0x17   : > { %328 = dma.hbm_to_vmem [thread:$0]  (!%p326_p0), %s148_s5, 128, %s150_s4, %s137_s6  }
  0x18   : > { %p155_p3 = pnand %p314_p1, %p154_p2 }
  0x19   : > { %s590_s7 = sand.u32 (!%p155_p3), 1, %s482_s10  }
  0x1a   : > { %158 = sbr.rel (%p155_p3) target bundleno = 158 (0x9e), region = 28  ;;  %s315_s8 = sshll.u32 (!%p155_p3), %s590_s7, 3 }
  0x1b   : > { %s161_s15 = scalar_lea.sflag (!%p155_p3), [#allocation3], %s590_s7  ;;  %s164_s16 = scalar_lea.vmem (!%p155_p3), [#allocation2], %s315_s8 }
  0x1f   : > { %469 = dma.done.wait (%p563_p8), %s161_s15, 128  }
  0x20   : > { %471 = vsyncadd (%p563_p8), %s161_s15, 4294967168  ;;  %p189_p4 = scmp.lt.s32.totalorder %s490_s12, 1  ;;  %v500_v0 = vmov 0   ;;  %s318_s26 = sshll.u32 %s490_s12, 3  ;;  %v192_v2 = vld [vmem:[%s164_s16] sm:$0xff] }
  0x21   : > { %384 = vset.pattern.permute.xlu0 %v500_v0  ;;  %s214_s21 = scalar_lea.hbm %s643_s2, %s318_s26  ;;  %s188_s29 = scalar_lea.vmem [#allocation5], %s315_s8 }
  0x22   : > { %s190_s18 = scalar_select %p189_p4, %s490_s12, 1 }
  0x23   : > { %s216_s30 = sshll.u32 %s188_s29, 4  ;;  %s218_s3 = sshll.u32 %s214_s21, 4  ;;  %s217_s30 = int_to_ptr.vmem [resolvable:$true] %s216_s30  ;;  %s219_s3 = int_to_ptr.hbm [resolvable:$true] %s218_s3 }
  0x24   : > { %s191_s25 = scalar_lea.vmem %s641_s0, %s190_s18  ;;  %s203_s4 = scalar_lea.sflag [#allocation4], %s590_s7 }
  0x25   : > { %v385_v1 = vld [vmem:[%s191_s25] ss:$0 sm:$0xff]  ;;  %s430_s5 = sshra.s32 %s219_s3, 4  ;;  %s436_s16 = scalar_lea.hbm %s643_s2, 16  ;;  %s431_s5 = int_to_ptr.hbm [resolvable:$true] %s430_s5 }
  0x26   : > { %197 = vperm.xlu0 %384, %v385_v1   ;;  %s432_s6 = scalar_lea.hbm %s431_s5, 8  ;;  %p437_p8 = scmp.lt.s32.totalorder %s431_s5, %s643_s2 }
  0x27   : > { %p433_p5 = scmp.ne.s32.totalorder %s431_s5, %s432_s6  ;;  %p438_p10 = scmp.lt.s32.totalorder %s436_s16, %s432_s6 }
  0x29   : > { %p434_p6 = pnand %p433_p5, %p567_p9  ;;  %p439_p13 = por %p438_p10, %p437_p8 }
  0x2b   : > { %p435_p7 = pneg %p434_p6 }
  0x2d   : > { %p440_p0 = pnand %p439_p13, %p435_p7 }
  0x98   : > { %v198_v3 = vpop.permute.xlu0 %197 }
  0x99   : > { %v200_v4 = vmul.f32 %v198_v3, %v192_v2 }
  0x9b   : > { %201 = vst [vmem:[%s188_s29] sm:$0xff] %v200_v4 }
  0x9c   : > { %443 = shalt.err (!%p440_p0)
}
  0x9d   : > { %323 = dma.vmem_to_hbm [thread:$0]  (%p567_p9), %s217_s30, 128, %s219_s3, %s203_s4  }
  0x9e PF: > { %s230_s7 = sand.u32 1, %s478_s9   ;;  %p330_p1 = pnand %p311_p12, %p574_p11 }
  0x9f   : > { %s231_s19 = scalar_lea.sflag [#allocation4], %s230_s7 }
  0xa0   : > { %p331_p2 = pneg %p330_p1 }
  0xa2   : > { %473 = dma.done.wait (%p331_p2), %s231_s19, 128  }
  0xa3   : > { %475 = vsyncadd (%p331_p2), %s231_s19, 4294967168  ;;  %s18_s14 = sadd.s32 1, %s498_s14   ;;  %s648_s9 = smov %s482_s10 }
  0xa4   : > { %p15_p3 = scmp.ge.s32.totalorder %s18_s14, 4   ;;  %s649_s10 = smov %s486_s11 }
  0xa5   : > { %s650_s11 = smov %s572_s23  ;;  %s651_s12 = smov %s494_s13 }
  0xa6   : > { %s652_s13 = smov %s654_s17  ;;  %17 = sbr.rel (!%p15_p3) target bundleno = 6 (0x6), region = 76 }
  0xab   :  { %237 = vsyncpa [#allocation3], 1 }
  0xac   :  { %239 = vsyncpa [#allocation3 + $0x1], 1 }
  0xad   :  { %240 = vsyncpa [#allocation4], 1 }
  0xae   :  { %242 = vsyncpa [#allocation4 + $0x1], 1 }

</bundles_post_ra>
